<compile_context>
chip_gen: v6e
topology: v6e:2x2x1
jax: 0.10.0
libtpu: 0.0.40
codegen_flags: <defaults>
</compile_context>

<pallas_src>
import jax
import jax.numpy as jnp
from jax.experimental import pallas as pl
from jax.experimental.pallas import tpu as pltpu


def gcn_kernel(adj_ref, x_ref, w_ref, b_ref, o_ref):
    adj = adj_ref[...]                       # bf16 [Np, Np] (0/1 entries, exact)
    x = x_ref[...]                           # f32  [Np, P]

    w1 = w_ref[0]                            # f32 [P, P]
    w2 = w_ref[1]                            # f32 [P, P]
    b1 = b_ref[0]                            # f32 [1, P]
    b2 = b_ref[1]                            # f32 [1, P]

    # --- Layer 1: keep (adj @ x) @ W1 (in_dim <= hidden_dim, so contract the
    # N x N matmul against the narrower operand). bf16 MXU inputs, f32 acc.
    ax = jnp.dot(adj, x.astype(jnp.bfloat16), preferred_element_type=jnp.float32)
    h = jnp.maximum(
        jnp.dot(ax, w1, preferred_element_type=jnp.float32) + b1, 0.0)

    # --- Layer 2 reassociated: adj @ (h @ W2). out_dim <= hidden_dim, so the
    # expensive N x N contraction sees the narrowest possible right operand.
    hw2 = jnp.dot(h, w2, preferred_element_type=jnp.float32)
    out = jnp.dot(adj, hw2.astype(jnp.bfloat16),
                  preferred_element_type=jnp.float32) + b2

    o_ref[...] = jnp.maximum(out, 0.0).astype(o_ref.dtype)


def _round_up(v, m):
    return (v + m - 1) // m * m


def _pad2d(a, rows, cols):
    r, c = a.shape
    return jnp.pad(a, ((0, rows - r), (0, cols - c)))


def gcn_forward(x, adj, w1, b1, w2, b2):
    n, f_in = x.shape
    f_hid = w1.shape[1]
    f_out = w2.shape[1]

    # Lane-dense padding: nodes -> multiple of 128 (adj's last dim maps to
    # lanes / MXU contraction), features -> common 128-multiple so weights and
    # biases can be stacked into single arrays.
    n_pad = _round_up(n, 128)
    p = max(_round_up(f_in, 128), _round_up(f_hid, 128), _round_up(f_out, 128))

    adj_p = _pad2d(adj, n_pad, n_pad).astype(jnp.bfloat16)   # 0/1 -> exact bf16
    x_p = _pad2d(x, n_pad, p)                                # f32
    w = jnp.stack([_pad2d(w1, p, p), _pad2d(w2, p, p)])      # [2, P, P] f32
    b = jnp.stack([_pad2d(b1, 1, p), _pad2d(b2, 1, p)])      # [2, 1, P] f32

    full = lambda shape: pl.BlockSpec(shape, lambda: (0,) * len(shape))

    out_p = pl.pallas_call(
        gcn_kernel,
        out_shape=jax.ShapeDtypeStruct((n_pad, p), jnp.float32),
        grid_spec=pl.GridSpec(
            grid=(),
            in_specs=[
                full(adj_p.shape),
                full(x_p.shape),
                full(w.shape),
                full(b.shape),
            ],
            out_specs=full((n_pad, p)),
        ),
        # Raise scoped VMEM (default 16/32 MiB) so a fully-resident adj keeps
        # working when scaled up on v5e/v6e; 64 MiB stays within every chip.
        compiler_params=pltpu.CompilerParams(vmem_limit_bytes=64 * 1024 * 1024),
    )(adj_p, x_p, w, b)

    # Slice padded result back to the true [N, out_dim] block.
    return out_p[:n, :f_out]


def init_linear_params(key, fan_in, fan_out):
    """Deterministic init mimicking nn.Linear default (uniform +-1/sqrt(fan_in)).
    Weight stored as [fan_in, fan_out] (PyTorch weight transposed)."""
    kw, kb = jax.random.split(key)
    bound = 1.0 / jnp.sqrt(jnp.float32(fan_in))
    w = jax.random.uniform(kw, (fan_in, fan_out), jnp.float32, -bound, bound)
    b = jax.random.uniform(kb, (1, fan_out), jnp.float32, -bound, bound)
    return w, b


if __name__ == "__main__":
    key = jax.random.PRNGKey(0)
    k_x, k_adj, k_l1, k_l2 = jax.random.split(key, 4)

    num_nodes = 8
    input_dim = 16
    hidden_dim = 32
    output_dim = 8

    # Node features.
    x = jax.random.normal(k_x, (num_nodes, input_dim), jnp.float32)

    # Symmetric 0/1 adjacency (no self loops), analogous to the module's adj_matrix.
    upper = (jax.random.uniform(k_adj, (num_nodes, num_nodes)) > 0.5).astype(jnp.float32)
    upper = jnp.triu(upper, k=1)
    adj = upper + upper.T

    w1, b1 = init_linear_params(k_l1, input_dim, hidden_dim)
    w2, b2 = init_linear_params(k_l2, hidden_dim, output_dim)

    out = jax.block_until_ready(gcn_forward(x, adj, w1, b1, w2, b2))
    assert out.shape == (num_nodes, output_dim)

    # (1) Module-exact f32 reference (PyTorch forward semantics); bf16 MXU
    #     inputs introduce only ~1e-3 relative rounding, check in norm.
    h_ref = jnp.maximum(adj @ x @ w1 + b1, 0.0)
    out_f32 = jnp.maximum(adj @ h_ref @ w2 + b2, 0.0)
    rel = jnp.linalg.norm(out - out_f32) / (jnp.linalg.norm(out_f32) + 1e-12)
    assert float(rel) < 3e-2, f"relative error vs f32 reference too large: {rel}"

    # (2) Precision-matched reference (same bf16 inputs to the adj matmuls).
    adj_bf = adj.astype(jnp.bfloat16)
    ax_m = jnp.dot(adj_bf, x.astype(jnp.bfloat16), preferred_element_type=jnp.float32)
    h_m = jnp.maximum(ax_m @ w1 + b1, 0.0)
    hw2_m = h_m @ w2
    out_m = jnp.maximum(
        jnp.dot(adj_bf, hw2_m.astype(jnp.bfloat16),
                preferred_element_type=jnp.float32) + b2, 0.0)
    assert jnp.allclose(out, out_m, atol=1e-3, rtol=1e-3)

    print("KERNEL_OK")
</pallas_src>

<mosaic_0001>
module attributes {stable_mosaic.version = 11 : i64} {
  func.func @gcn_kernel(%arg0: memref<128x128xbf16, #tpu.memory_space<vmem>>, %arg1: memref<128x128xf32, #tpu.memory_space<vmem>>, %arg2: memref<2x128x128xf32, #tpu.memory_space<vmem>>, %arg3: memref<2x1x128xf32, #tpu.memory_space<vmem>>, %arg4: memref<128x128xf32, #tpu.memory_space<vmem>>) attributes {dimension_semantics = [], scalar_prefetch = 0 : i64, scratch_operands = 0 : i64, tpu.core_type = #tpu.core_type<tc>} {
    %c0 = arith.constant 0 : index
    %c0_0 = arith.constant 0 : index
    %0 = vector.load %arg0[%c0, %c0_0] : memref<128x128xbf16, #tpu.memory_space<vmem>>, vector<128x128xbf16>
    %c0_1 = arith.constant 0 : index
    %c0_2 = arith.constant 0 : index
    %1 = vector.load %arg1[%c0_1, %c0_2] : memref<128x128xf32, #tpu.memory_space<vmem>>, vector<128x128xf32>
    %c0_3 = arith.constant 0 : index
    %c0_4 = arith.constant 0 : index
    %c0_5 = arith.constant 0 : index
    %2 = vector.load %arg2[%c0_3, %c0_4, %c0_5] : memref<2x128x128xf32, #tpu.memory_space<vmem>>, vector<1x128x128xf32>
    %3 = vector.shape_cast %2 : vector<1x128x128xf32> to vector<128x128xf32>
    %c1 = arith.constant 1 : index
    %c0_6 = arith.constant 0 : index
    %c0_7 = arith.constant 0 : index
    %4 = vector.load %arg2[%c1, %c0_6, %c0_7] : memref<2x128x128xf32, #tpu.memory_space<vmem>>, vector<1x128x128xf32>
    %5 = vector.shape_cast %4 : vector<1x128x128xf32> to vector<128x128xf32>
    %c0_8 = arith.constant 0 : index
    %c0_9 = arith.constant 0 : index
    %c0_10 = arith.constant 0 : index
    %6 = vector.load %arg3[%c0_8, %c0_9, %c0_10] : memref<2x1x128xf32, #tpu.memory_space<vmem>>, vector<1x1x128xf32>
    %7 = vector.shape_cast %6 : vector<1x1x128xf32> to vector<1x128xf32>
    %c1_11 = arith.constant 1 : index
    %c0_12 = arith.constant 0 : index
    %c0_13 = arith.constant 0 : index
    %8 = vector.load %arg3[%c1_11, %c0_12, %c0_13] : memref<2x1x128xf32, #tpu.memory_space<vmem>>, vector<1x1x128xf32>
    %9 = vector.shape_cast %8 : vector<1x1x128xf32> to vector<1x128xf32>
    %10 = arith.truncf %1 : vector<128x128xf32> to vector<128x128xbf16>
    %cst = arith.constant dense<0.000000e+00> : vector<128x128xf32>
    %11 = tpu.matmul %0, %10, %cst {dimension_numbers = #tpu.dot_dimension_numbers<[1], [0], [0], [1], [0, 0, 1, 1], [], []>} : vector<128x128xbf16>, vector<128x128xbf16>, vector<128x128xf32> -> vector<128x128xf32>
    %cst_14 = arith.constant dense<0.000000e+00> : vector<128x128xf32>
    %12 = tpu.matmul %11, %3, %cst_14 {dimension_numbers = #tpu.dot_dimension_numbers<[1], [0], [0], [1], [0, 0, 1, 1], [], []>} : vector<128x128xf32>, vector<128x128xf32>, vector<128x128xf32> -> vector<128x128xf32>
    %13 = vector.broadcast %7 : vector<1x128xf32> to vector<128x128xf32>
    %14 = arith.addf %12, %13 : vector<128x128xf32>
    %cst_15 = arith.constant 0.000000e+00 : f32
    %15 = vector.broadcast %cst_15 : f32 to vector<128x128xf32>
    %16 = arith.maximumf %14, %15 : vector<128x128xf32>
    %cst_16 = arith.constant dense<0.000000e+00> : vector<128x128xf32>
    %17 = tpu.matmul %16, %5, %cst_16 {dimension_numbers = #tpu.dot_dimension_numbers<[1], [0], [0], [1], [0, 0, 1, 1], [], []>} : vector<128x128xf32>, vector<128x128xf32>, vector<128x128xf32> -> vector<128x128xf32>
    %18 = arith.truncf %17 : vector<128x128xf32> to vector<128x128xbf16>
    %cst_17 = arith.constant dense<0.000000e+00> : vector<128x128xf32>
    %19 = tpu.matmul %0, %18, %cst_17 {dimension_numbers = #tpu.dot_dimension_numbers<[1], [0], [0], [1], [0, 0, 1, 1], [], []>} : vector<128x128xbf16>, vector<128x128xbf16>, vector<128x128xf32> -> vector<128x128xf32>
    %20 = vector.broadcast %9 : vector<1x128xf32> to vector<128x128xf32>
    %21 = arith.addf %19, %20 : vector<128x128xf32>
    %cst_18 = arith.constant 0.000000e+00 : f32
    %22 = vector.broadcast %cst_18 : f32 to vector<128x128xf32>
    %23 = arith.maximumf %21, %22 : vector<128x128xf32>
    %c0_19 = arith.constant 0 : index
    %c0_20 = arith.constant 0 : index
    %24 = vector.load %arg4[%c0_19, %c0_20] : memref<128x128xf32, #tpu.memory_space<vmem>>, vector<128x128xf32>
    tpu.vector_store %arg4[%c0_19, %c0_20], %23 {strides = array<i32>} : memref<128x128xf32, #tpu.memory_space<vmem>>, vector<128x128xf32>,
    return
  }
}

</mosaic_0001>

<bundles_post_ra>
// kernel: tpu_custom_call.1
= control target key start
LH: loop header
LB: loop body
LE: loop exit
PB: predicated region body
PF: predicated region fallthrough
CT: control target
= control target key end

     0   :  { %9 = vsyncpa [#allocation3], 0  ;;  %s1249_s0 = inlined_call_operand.hbm [shape: bf16[128,128], index: 0, kind: input, shape index: {}]   ;;  %s1250_s1 = inlined_call_operand.hbm [shape: f32[128,128], index: 1, kind: input, shape index: {}]   ;;  %s1251_s2 = inlined_call_operand.hbm [shape: f32[2,128,128], index: 2, kind: input, shape index: {}]   ;;  %s1252_s3 = inlined_call_operand.vmem [shape: f32[2,1,128], index: 3, kind: input, shape index: {}]   ;;  %s1253_s4 = inlined_call_operand.hbm [shape: f32[128,128], index: 4, kind: output, shape index: {}]  }
   0x1   :  { %10 = vsyncpa [#allocation6], 0 }
   0x2   :  { %11 = vsyncpa [#allocation4], 0  ;;  %s1139_s15 = smov [#allocation5]  }
   0x3   :  { %s29_s16 = sshll.u32 %s1139_s15, 4  ;;  %s30_s16 = int_to_ptr.vmem [resolvable:$true] %s29_s16 }
   0x4   :  { %s1061_s17 = scalar_lea.vmem %s30_s16, 2048  ;;  %p1066_p1 = scmp.lt.s32.totalorder %s30_s16, %s30_s16 }
   0x5   :  { %p1062_p0 = scmp.ne.s32.totalorder %s30_s16, %s1061_s17  ;;  %p1067_p2 = scmp.lt.s32.totalorder %s1061_s17, %s1061_s17 }
   0x7   :  { %p1068_p3 = por %p1067_p2, %p1066_p1 }
   0x9   :  { %p1069_p4 = pnand %p1068_p3, %p1062_p0 }
   0xb   :  { %1072 = shalt.err (!%p1069_p4)
}
   0xc   :  { %s1140_s18 = smov 128   ;;  %s1141_s19 = smov 8  }
   0xd   :  { %35 = dma.hbm_to_vmem [thread:$0]  %s1250_s1, 2048, %s30_s16, [#allocation6], %s1140_s18, %s1140_s18, %s1141_s19  }
   0xe   :  { %s1142_s22 = smov [#allocation2]  }
   0xf   :  { %s17_s23 = sshll.u32 %s1142_s22, 4  ;;  %s18_s23 = int_to_ptr.vmem [resolvable:$true] %s17_s23 }
  0x10   :  { %s1081_s24 = scalar_lea.vmem %s18_s23, 1024  ;;  %p1086_p6 = scmp.lt.s32.totalorder %s18_s23, %s18_s23 }
  0x11   :  { %p1082_p5 = scmp.ne.s32.totalorder %s18_s23, %s1081_s24  ;;  %p1087_p7 = scmp.lt.s32.totalorder %s1081_s24, %s1081_s24 }
  0x13   :  { %p1088_p8 = por %p1087_p7, %p1086_p6 }
  0x15   :  { %p1089_p9 = pnand %p1088_p8, %p1082_p5 }
  0x17   :  { %1092 = shalt.err (!%p1089_p9)
}
  0x18   :  { %s1143_s25 = smov 64   ;;  %s1144_s26 = smov 4  }
  0x19   :  { %23 = dma.hbm_to_vmem [thread:$0]  %s1249_s0, 1024, %s18_s23, [#allocation3], %s1143_s25, %s1143_s25, %s1144_s26  }
  0x1a   :  { %s1145_s29 = smov [#allocation7]  }
  0x1b   :  { %s41_s30 = sshll.u32 %s1145_s29, 4  ;;  %s42_s30 = int_to_ptr.vmem [resolvable:$true] %s41_s30 }
  0x1c   :  { %s1101_s1 = scalar_lea.vmem %s42_s30, 4096  ;;  %p1106_p11 = scmp.lt.s32.totalorder %s42_s30, %s42_s30 }
  0x1d   :  { %p1102_p10 = scmp.ne.s32.totalorder %s42_s30, %s1101_s1  ;;  %p1107_p12 = scmp.lt.s32.totalorder %s1101_s1, %s1101_s1 }
  0x1f   :  { %p1108_p13 = por %p1107_p12, %p1106_p11 }
  0x21   :  { %p1109_p0 = pnand %p1108_p13, %p1102_p10 }
  0x23   :  { %1112 = shalt.err (!%p1109_p0)
}
  0x24   :  { %47 = dma.hbm_to_vmem [thread:$0]  %s1251_s2, 4096, %s42_s30, [#allocation6], %s1140_s18, %s1140_s18, %s1141_s19  }
  0x25   :  { %1133 = dma.done.wait [#allocation3], 1024  }
  0x26   :  { %1134 = vsyncadd [#allocation3], 4294966272 }
  0x27   :  { %1135 = dma.done.wait [#allocation6], 6144  }
  0x28   :  { %1136 = vsyncadd [#allocation6], 4294961152  ;;  %v90_v0 = vld [vmem:[#allocation5 + $0x70] sm:$0xff]  ;;  %v91_v1 = vld [vmem:[#allocation5 + $0x78] sm:$0xff] }
  0x29   :  { %v88_v2 = vld [vmem:[#allocation5 + $0x60] sm:$0xff]  ;;  %v135_v3 = vpack.c.bf16 %v91_v1, %v90_v0  ;;  %v89_v4 = vld [vmem:[#allocation5 + $0x68] sm:$0xff]  ;;  %v86_v6 = vld [vmem:[#allocation5 + $0x50] sm:$0xff] }
  0x2a   :  { %v134_v5 = vpack.c.bf16 %v89_v4, %v88_v2  ;;  %v87_v7 = vld [vmem:[#allocation5 + $0x58] sm:$0xff]  ;;  %v84_v8 = vld [vmem:[#allocation5 + $0x40] sm:$0xff]  ;;  %v85_v10 = vld [vmem:[#allocation5 + $0x48] sm:$0xff] }
  0x2b   :  { %861 = vmatprep.subr.bf16.mxu0 %v135_v3  ;;  %v133_v9 = vpack.c.bf16 %v87_v7, %v86_v6  ;;  %v1187_v11 = vld [vmem:[#allocation2] sm:$0xff]   ;;  %v132_v12 = vpack.c.bf16 %v85_v10, %v84_v8  ;;  %v82_v13 = vld [vmem:[#allocation5 + $0x30] sm:$0xff]  ;;  %v83_v14 = vld [vmem:[#allocation5 + $0x38] sm:$0xff] }
  0x2c   :  { %862 = vmatpush3.bf16.msra.mxu0 %v135_v3  ;;  %877 = vmatprep.mubr.bf16.mxu0 %v1187_v11  ;;  %v131_v15 = vpack.c.bf16 %v83_v14, %v82_v13  ;;  %v107_v16 = vld [vmem:[#allocation7 + $0x78] sm:$0xff]  ;;  %v106_v17 = vld [vmem:[#allocation7 + $0x70] sm:$0xff]  ;;  %v80_v18 = vld [vmem:[#allocation5 + $0x20] sm:$0xff] }
  0x2d   :  { %863 = vmatprep.subr.bf16.mxu0 %v134_v5  ;;  %v81_v19 = vld [vmem:[#allocation5 + $0x28] sm:$0xff]  ;;  %893 = vmatprep.subr.mxu1 %v107_v16  ;;  %v104_v22 = vld [vmem:[#allocation7 + $0x60] sm:$0xff]  ;;  %v78_v23 = vld [vmem:[#allocation5 + $0x10] sm:$0xff] }
  0x2e   :  { %894 = vmatpush3.msra.mxu1 %v107_v16  ;;  %v105_v20 = vld [vmem:[#allocation7 + $0x68] sm:$0xff]  ;;  %v130_v21 = vpack.c.bf16 %v81_v19, %v80_v18  ;;  %v79_v24 = vld [vmem:[#allocation5 + $0x18] sm:$0xff]  ;;  %v102_v27 = vld [vmem:[#allocation7 + $0x50] sm:$0xff] }
  0x2f   :  { %895 = vmatprep.subr.mxu1 %v106_v17  ;;  %v103_v25 = vld [vmem:[#allocation7 + $0x58] sm:$0xff]  ;;  %v129_v26 = vpack.c.bf16 %v79_v24, %v78_v23  ;;  %v76_v28 = vld [vmem:[#allocation5] sm:$0xff]  ;;  %v77_v29 = vld [vmem:[#allocation5 + $0x8] sm:$0xff] }
  0x30   :  { %864 = vmatpush3.bf16.msra.mxu0 %v134_v5  ;;  %896 = vmatpush3.msra.mxu1 %v106_v17  ;;  %v101_v30 = vld [vmem:[#allocation7 + $0x48] sm:$0xff]  ;;  %v128_v31 = vpack.c.bf16 %v77_v29, %v76_v28  ;;  %v100_v32 = vld [vmem:[#allocation7 + $0x40] sm:$0xff]  ;;  %v99_v33 = vld [vmem:[#allocation7 + $0x38] sm:$0xff] }
  0x31   :  { %865 = vmatprep.subr.bf16.mxu0 %v133_v9  ;;  %897 = vmatprep.subr.mxu1 %v105_v20  ;;  %v98_v34 = vld [vmem:[#allocation7 + $0x30] sm:$0xff]  ;;  %v1190_v35 = vld [vmem:[#allocation2 + $0x8] sm:$0xff]   ;;  %v96_v38 = vld [vmem:[#allocation7 + $0x20] sm:$0xff] }
  0x32   :  { %898 = vmatpush3.msra.mxu1 %v105_v20  ;;  %v97_v36 = vld [vmem:[#allocation7 + $0x28] sm:$0xff]  ;;  %v1192_v37 = vld [vmem:[#allocation2 + $0x10] sm:$0xff]   ;;  %v95_v39 = vld [vmem:[#allocation7 + $0x18] sm:$0xff] }
  0x33   :  { %899 = vmatprep.subr.mxu1 %v104_v22  ;;  %v1196_v40 = vld [vmem:[#allocation2 + $0x18] sm:$0xff]   ;;  %v1198_v41 = vld [vmem:[#allocation2 + $0x20] sm:$0xff]   ;;  %v1202_v42 = vld [vmem:[#allocation2 + $0x28] sm:$0xff]  }
  0x34   :  { %866 = vmatpush3.bf16.msra.mxu0 %v133_v9  ;;  %900 = vmatpush3.msra.mxu1 %v104_v22  ;;  %v1204_v43 = vld [vmem:[#allocation2 + $0x30] sm:$0xff]   ;;  %v1208_v44 = vld [vmem:[#allocation2 + $0x38] sm:$0xff]   ;;  %v93_v46 = vld [vmem:[#allocation7 + $0x8] sm:$0xff] }
  0x35   :  { %867 = vmatprep.subr.bf16.mxu0 %v132_v12  ;;  %901 = vmatprep.subr.mxu1 %v103_v25  ;;  %v94_v45 = vld [vmem:[#allocation7 + $0x10] sm:$0xff]  ;;  %v92_v47 = vld [vmem:[#allocation7] sm:$0xff]  ;;  %v124_v48 = vld [vmem:[#allocation7 + $0xf8] sm:$0xff] }
  0x36   :  { %902 = vmatpush3.msra.mxu1 %v103_v25  ;;  %v123_v49 = vld [vmem:[#allocation7 + $0xf0] sm:$0xff]  ;;  %v122_v50 = vld [vmem:[#allocation7 + $0xe8] sm:$0xff]  ;;  %v121_v51 = vld [vmem:[#allocation7 + $0xe0] sm:$0xff] }
  0x37   :  { %903 = vmatprep.subr.mxu1 %v102_v27  ;;  %v120_v52 = vld [vmem:[#allocation7 + $0xd8] sm:$0xff]  ;;  %v119_v53 = vld [vmem:[#allocation7 + $0xd0] sm:$0xff]  ;;  %v118_v54 = vld [vmem:[#allocation7 + $0xc8] sm:$0xff] }
  0x38   :  { %868 = vmatpush3.bf16.msra.mxu0 %v132_v12  ;;  %904 = vmatpush3.msra.mxu1 %v102_v27  ;;  %v117_v55 = vld [vmem:[#allocation7 + $0xc0] sm:$0xff]  ;;  %v116_v56 = vld [vmem:[#allocation7 + $0xb8] sm:$0xff]  ;;  %v115_v57 = vld [vmem:[#allocation7 + $0xb0] sm:$0xff] }
  0x39   :  { %869 = vmatprep.subr.bf16.mxu0 %v131_v15  ;;  %905 = vmatprep.subr.mxu1 %v101_v30  ;;  %v114_v58 = vld [vmem:[#allocation7 + $0xa8] sm:$0xff]  ;;  %v113_v59 = vld [vmem:[#allocation7 + $0xa0] sm:$0xff]  ;;  %v112_v13 = vld [vmem:[#allocation7 + $0x98] sm:$0xff] }
  0x3a   :  { %906 = vmatpush3.msra.mxu1 %v101_v30  ;;  %v111_v14 = vld [vmem:[#allocation7 + $0x90] sm:$0xff]  ;;  %v109_v16 = vld [vmem:[#allocation7 + $0x80] sm:$0xff] }
  0x3b   :  { %907 = vmatprep.subr.mxu1 %v100_v32  ;;  %v763_v17 = vld [vmem:[%s1252_s3] ss:$0 sm:$0xff] }
  0x3c   :  { %870 = vmatpush3.bf16.msra.mxu0 %v131_v15  ;;  %908 = vmatpush3.msra.mxu1 %v100_v32  ;;  %v110_v15 = vld [vmem:[#allocation7 + $0x88] sm:$0xff] }
  0x3d   :  { %871 = vmatprep.subr.bf16.mxu0 %v130_v21  ;;  %909 = vmatprep.subr.mxu1 %v99_v33 }
  0x3e   :  { %910 = vmatpush3.msra.mxu1 %v99_v33 }
  0x3f   :  { %911 = vmatprep.subr.mxu1 %v98_v34 }
  0x40   :  { %872 = vmatpush3.bf16.msra.mxu0 %v130_v21  ;;  %912 = vmatpush3.msra.mxu1 %v98_v34 }
  0x41   :  { %873 = vmatprep.subr.bf16.mxu0 %v129_v26  ;;  %913 = vmatprep.subr.mxu1 %v97_v36 }
  0x42   :  { %914 = vmatpush3.msra.mxu1 %v97_v36 }
  0x43   :  { %915 = vmatprep.subr.mxu1 %v96_v38 }
  0x44   :  { %874 = vmatpush3.bf16.msra.mxu0 %v129_v26  ;;  %916 = vmatpush3.msra.mxu1 %v96_v38 }
  0x45   :  { %875 = vmatprep.subr.bf16.mxu0 %v128_v31  ;;  %917 = vmatprep.subr.mxu1 %v95_v39 }
  0x46   :  { %918 = vmatpush3.msra.mxu1 %v95_v39 }
  0x47   :  { %919 = vmatprep.subr.mxu1 %v94_v45 }
  0x48   :  { %876 = vmatpush3.bf16.msra.mxu0 %v128_v31  ;;  %920 = vmatpush3.msra.mxu1 %v94_v45 }
  0x49   :  { %921 = vmatprep.subr.mxu1 %v93_v46  ;;  %949 = vmatprep.subr.mxu0 %v124_v48 }
  0x4a   :  { %922 = vmatpush3.msra.mxu1 %v93_v46 }
  0x4b   :  { %878 = vmatmul.mubr.bf16.vlgmr.msra.gmra.mxu0 %v1190_v35  ;;  %923 = vmatprep.subr.mxu1 %v92_v47 }
  0x4c   :  { %881 = vmatprep.mubr.bf16.mxu0 %v1192_v37  ;;  %924 = vmatpush3.msra.mxu1 %v92_v47 }
  0x4d   :  { %950 = vmatpush3.msra.mxu0 %v124_v48 }
  0x4e   :  { %951 = vmatprep.subr.mxu0 %v123_v49 }
  0x4f   :  { %952 = vmatpush3.msra.mxu0 %v123_v49 }
  0x50   :  { %953 = vmatprep.subr.mxu0 %v122_v50 }
  0x51   :  { %954 = vmatpush3.msra.mxu0 %v122_v50 }
  0x52   :  { %955 = vmatprep.subr.mxu0 %v121_v51 }
  0x53   :  { %882 = vmatmul.mubr.bf16.gmra.mxu0 %v1196_v40 }
  0x54   :  { %885 = vmatprep.mubr.bf16.mxu0 %v1198_v41  ;;  %956 = vmatpush3.msra.mxu0 %v121_v51 }
  0x55   :  { %957 = vmatprep.subr.mxu0 %v120_v52 }
  0x56   :  { %958 = vmatpush3.msra.mxu0 %v120_v52 }
  0x57   :  { %959 = vmatprep.subr.mxu0 %v119_v53 }
  0x58   :  { %960 = vmatpush3.msra.mxu0 %v119_v53 }
  0x59   :  { %961 = vmatprep.subr.mxu0 %v118_v54 }
  0x5a   :  { %962 = vmatpush3.msra.mxu0 %v118_v54 }
  0x5b   :  { %886 = vmatmul.mubr.bf16.gmra.mxu0 %v1202_v42  ;;  %963 = vmatprep.subr.mxu0 %v117_v55 }
  0x5c   :  { %889 = vmatprep.mubr.bf16.mxu0 %v1204_v43  ;;  %964 = vmatpush3.msra.mxu0 %v117_v55 }
  0x5d   :  { %965 = vmatprep.subr.mxu0 %v116_v56 }
  0x5e   :  { %966 = vmatpush3.msra.mxu0 %v116_v56 }
  0x5f   :  { %967 = vmatprep.subr.mxu0 %v115_v57 }
  0x60   :  { %968 = vmatpush3.msra.mxu0 %v115_v57 }
  0x61   :  { %969 = vmatprep.subr.mxu0 %v114_v58 }
  0x62   :  { %970 = vmatpush3.msra.mxu0 %v114_v58 }
  0x63   :  { %890 = vmatmul.mubr.bf16.gmra.mxu0 %v1208_v44  ;;  %971 = vmatprep.subr.mxu0 %v113_v59 }
  0x64   :  { %972 = vmatpush3.msra.mxu0 %v113_v59 }
  0x65   :  { %973 = vmatprep.subr.mxu0 %v112_v13 }
  0x66   :  { %974 = vmatpush3.msra.mxu0 %v112_v13 }
  0x67   :  { %975 = vmatprep.subr.mxu0 %v111_v14 }
  0x68   :  { %976 = vmatpush3.msra.mxu0 %v111_v14 }
  0x69   :  { %977 = vmatprep.subr.mxu0 %v110_v15 }
  0x6a   :  { %978 = vmatpush3.msra.mxu0 %v110_v15 }
  0x6b   :  { %979 = vmatprep.subr.mxu0 %v109_v16 }
  0x6c   :  { %980 = vmatpush3.msra.mxu0 %v109_v16 }
 0x10b   :  { %v879_v60 = vpop.f32.mrf.mxu0 }
 0x10d   :  { %v218_v61 = vpop.f32.mrf.mxu0 }
 0x10e   :  { %925 = vmatprep.mubr.f32.mxu1 %v218_v61 }
 0x10f   :  { %v880_v62 = vpop.f32.mrf.mxu0 }
 0x111   :  { %v221_v63 = vpop.f32.mrf.mxu0 }
 0x112   :  { %926 = vmatmul.mubr.f32.vlgmr.msra.gmra.mxu1 %v221_v63 }
 0x113   :  { %v883_v0 = vpop.f32.mrf.mxu0  ;;  %928 = vmatprep.mubr.f32.mxu1 %v879_v60 }
 0x115   :  { %v234_v1 = vpop.f32.mrf.mxu0 }
 0x116   :  { %929 = vmatmul.mubr.f32.gmra.mxu1 %v880_v62 }
 0x117   :  { %v884_v2 = vpop.f32.mrf.mxu0  ;;  %931 = vmatprep.mubr.f32.mxu1 %v234_v1 }
 0x119   :  { %v237_v3 = vpop.f32.mrf.mxu0 }
 0x11a   :  { %932 = vmatmul.mubr.f32.gmra.mxu1 %v237_v3 }
 0x11b   :  { %v887_v4 = vpop.f32.mrf.mxu0  ;;  %934 = vmatprep.mubr.f32.mxu1 %v883_v0 }
 0x11d   :  { %v250_v5 = vpop.f32.mrf.mxu0 }
 0x11e   :  { %935 = vmatmul.mubr.f32.gmra.mxu1 %v884_v2 }
 0x11f   :  { %v888_v6 = vpop.f32.mrf.mxu0  ;;  %937 = vmatprep.mubr.f32.mxu1 %v250_v5 }
 0x121   :  { %v253_v7 = vpop.f32.mrf.mxu0 }
 0x122   :  { %938 = vmatmul.mubr.f32.gmra.mxu1 %v253_v7 }
 0x123   :  { %v891_v8 = vpop.f32.mrf.mxu0  ;;  %940 = vmatprep.mubr.f32.mxu1 %v887_v4 }
 0x125   :  { %v266_v9 = vpop.f32.mrf.mxu0 }
 0x126   :  { %941 = vmatmul.mubr.f32.gmra.mxu1 %v888_v6 }
 0x127   :  { %v892_v10 = vpop.f32.mrf.mxu0  ;;  %943 = vmatprep.mubr.f32.mxu1 %v266_v9 }
 0x129   :  { %v269_v12 = vpop.f32.mrf.mxu0 }
 0x12a   :  { %944 = vmatmul.mubr.f32.gmra.mxu1 %v269_v12 }
 0x12b   :  { %946 = vmatprep.mubr.f32.mxu1 %v891_v8 }
 0x12e   :  { %947 = vmatmul.mubr.f32.gmra.mxu1 %v892_v10 }
 0x12f   :  { %1021 = vmatprep.mubr.bf16.mxu1 %v1187_v11 }
 0x1d2   :  { %v927_v18 = vpop.f32.mrf.mxu1 }
 0x1d3   :  { %v359_v19 = vadd.f32 %v927_v18, %v763_v17 }
 0x1d4   :  { %v353_v20 = vpop.f32.mrf.mxu1 }
 0x1d5   :  { %v354_v11 = vadd.f32 %v763_v17, %v353_v20  ;;  %v433_v23 = vmax.f32 %v359_v19, 0.0 }
 0x1d6   :  { %v930_v21 = vpop.f32.mrf.mxu1 }
 0x1d7   :  { %v432_v22 = vmax.f32 %v354_v11, 0.0  ;;  %v369_v24 = vadd.f32 %v930_v21, %v763_v17 }
 0x1d8   :  { %v363_v25 = vpop.f32.mrf.mxu1 }
 0x1d9   :  { %v364_v26 = vadd.f32 %v763_v17, %v363_v25  ;;  %981 = vmatprep.mubr.f32.mxu0 %v432_v22  ;;  %v435_v29 = vmax.f32 %v369_v24, 0.0 }
 0x1da   :  { %v933_v27 = vpop.f32.mrf.mxu1  ;;  %982 = vmatmul.mubr.f32.vlgmr.msra.gmra.mxu0 %v433_v23 }
 0x1db   :  { %v434_v28 = vmax.f32 %v364_v26, 0.0  ;;  %v379_v30 = vadd.f32 %v933_v27, %v763_v17 }
 0x1dc   :  { %v373_v31 = vpop.f32.mrf.mxu1 }
 0x1dd   :  { %v374_v32 = vadd.f32 %v763_v17, %v373_v31  ;;  %984 = vmatprep.mubr.f32.mxu0 %v434_v28  ;;  %v437_v36 = vmax.f32 %v379_v30, 0.0 }
 0x1de   :  { %v936_v33 = vpop.f32.mrf.mxu1  ;;  %985 = vmatmul.mubr.f32.gmra.mxu0 %v435_v29 }
 0x1df   :  { %v436_v34 = vmax.f32 %v374_v32, 0.0  ;;  %v389_v38 = vadd.f32 %v936_v33, %v763_v17  ;;  %v1225_v32 = vld [vmem:[%s1252_s3 + $0x1] ss:$0 sm:$0xff]  ;;  %s1146_s3 = smov [#allocation8]  }
 0x1e0   :  { %v383_v39 = vpop.f32.mrf.mxu1  ;;  %s741_s9 = sshll.u32 %s1146_s3, 4  ;;  %s742_s9 = int_to_ptr.vmem [resolvable:$true] %s741_s9 }
 0x1e1   :  { %v384_v45 = vadd.f32 %v763_v17, %v383_v39  ;;  %987 = vmatprep.mubr.f32.mxu0 %v436_v34  ;;  %v439_v48 = vmax.f32 %v389_v38, 0.0  ;;  %s1113_s10 = scalar_lea.vmem %s742_s9, 2048  ;;  %p1118_p2 = scmp.lt.s32.totalorder %s742_s9, %s742_s9 }
 0x1e2   :  { %v939_v46 = vpop.f32.mrf.mxu1  ;;  %988 = vmatmul.mubr.f32.gmra.mxu0 %v437_v36  ;;  %p1114_p1 = scmp.ne.s32.totalorder %s742_s9, %s1113_s10  ;;  %p1119_p3 = scmp.lt.s32.totalorder %s1113_s10, %s1113_s10 }
 0x1e3   :  { %v438_v47 = vmax.f32 %v384_v45, 0.0  ;;  %v399_v49 = vadd.f32 %v939_v46, %v763_v17 }
 0x1e4   :  { %v393_v50 = vpop.f32.mrf.mxu1  ;;  %p1120_p4 = por %p1119_p3, %p1118_p2 }
 0x1e5   :  { %v394_v51 = vadd.f32 %v763_v17, %v393_v50  ;;  %990 = vmatprep.mubr.f32.mxu0 %v438_v47  ;;  %v441_v54 = vmax.f32 %v399_v49, 0.0 }
 0x1e6   :  { %v942_v52 = vpop.f32.mrf.mxu1  ;;  %991 = vmatmul.mubr.f32.gmra.mxu0 %v439_v48  ;;  %p1121_p5 = pnand %p1120_p4, %p1114_p1 }
 0x1e7   :  { %v440_v53 = vmax.f32 %v394_v51, 0.0  ;;  %v409_v55 = vadd.f32 %v942_v52, %v763_v17 }
 0x1e8   :  { %v403_v56 = vpop.f32.mrf.mxu1 }
 0x1e9   :  { %v404_v57 = vadd.f32 %v763_v17, %v403_v56  ;;  %993 = vmatprep.mubr.f32.mxu0 %v440_v53  ;;  %v443_v60 = vmax.f32 %v409_v55, 0.0 }
 0x1ea   :  { %v945_v58 = vpop.f32.mrf.mxu1  ;;  %994 = vmatmul.mubr.f32.gmra.mxu0 %v441_v54 }
 0x1eb   :  { %v442_v59 = vmax.f32 %v404_v57, 0.0  ;;  %v419_v61 = vadd.f32 %v945_v58, %v763_v17 }
 0x1ec   :  { %v413_v62 = vpop.f32.mrf.mxu1 }
 0x1ed   :  { %v414_v63 = vadd.f32 %v763_v17, %v413_v62  ;;  %996 = vmatprep.mubr.f32.mxu0 %v442_v59  ;;  %v445_v2 = vmax.f32 %v419_v61, 0.0 }
 0x1ee   :  { %v948_v0 = vpop.f32.mrf.mxu1  ;;  %997 = vmatmul.mubr.f32.gmra.mxu0 %v443_v60 }
 0x1ef   :  { %v444_v1 = vmax.f32 %v414_v63, 0.0  ;;  %v429_v3 = vadd.f32 %v948_v0, %v763_v17 }
 0x1f0   :  { %v423_v4 = vpop.f32.mrf.mxu1 }
 0x1f1   :  { %v424_v5 = vadd.f32 %v763_v17, %v423_v4  ;;  %999 = vmatprep.mubr.f32.mxu0 %v444_v1  ;;  %v447_v7 = vmax.f32 %v429_v3, 0.0 }
 0x1f2   :  { %1000 = vmatmul.mubr.f32.gmra.mxu0 %v445_v2 }
 0x1f3   :  { %v446_v6 = vmax.f32 %v424_v5, 0.0 }
 0x1f5   :  { %1002 = vmatprep.mubr.f32.mxu0 %v446_v6 }
 0x1f6   :  { %1003 = vmatmul.mubr.f32.gmra.mxu0 %v447_v7 }
 0x29a   :  { %v983_v8 = vpop.f32.mrf.mxu0 }
 0x29c   :  { %v514_v9 = vpop.f32.mrf.mxu0 }
 0x29d   :  { %v593_v31 = vpack.c.bf16 %v983_v8, %v514_v9 }
 0x29e   :  { %v986_v10 = vpop.f32.mrf.mxu0 }
 0x2a0   :  { %v524_v12 = vpop.f32.mrf.mxu0 }
 0x2a1   :  { %v594_v30 = vpack.c.bf16 %v986_v10, %v524_v12 }
 0x2a2   :  { %v989_v13 = vpop.f32.mrf.mxu0 }
 0x2a4   :  { %v534_v14 = vpop.f32.mrf.mxu0 }
 0x2a5   :  { %v595_v29 = vpack.c.bf16 %v989_v13, %v534_v14 }
 0x2a6   :  { %v992_v15 = vpop.f32.mrf.mxu0 }
 0x2a8   :  { %v544_v16 = vpop.f32.mrf.mxu0 }
 0x2a9   :  { %v596_v28 = vpack.c.bf16 %v992_v15, %v544_v16 }
 0x2aa   :  { %v995_v18 = vpop.f32.mrf.mxu0 }
 0x2ac   :  { %v554_v19 = vpop.f32.mrf.mxu0 }
 0x2ad   :  { %v597_v27 = vpack.c.bf16 %v995_v18, %v554_v19 }
 0x2ae   :  { %v998_v20 = vpop.f32.mrf.mxu0 }
 0x2b0   :  { %v564_v11 = vpop.f32.mrf.mxu0 }
 0x2b1   :  { %v598_v26 = vpack.c.bf16 %v998_v20, %v564_v11 }
 0x2b2   :  { %v1001_v21 = vpop.f32.mrf.mxu0 }
 0x2b4   :  { %v574_v17 = vpop.f32.mrf.mxu0 }
 0x2b5   :  { %v599_v25 = vpack.c.bf16 %v1001_v21, %v574_v17 }
 0x2b6   :  { %v1004_v22 = vpop.f32.mrf.mxu0 }
 0x2b8   :  { %v584_v23 = vpop.f32.mrf.mxu0 }
 0x2b9   :  { %v600_v24 = vpack.c.bf16 %v1004_v22, %v584_v23 }
 0x2bb   :  { %1005 = vmatprep.subr.bf16.mxu1 %v600_v24 }
 0x2bc   :  { %1006 = vmatpush3.bf16.msra.mxu1 %v600_v24 }
 0x2bd   :  { %1007 = vmatprep.subr.bf16.mxu1 %v599_v25 }
 0x2c0   :  { %1008 = vmatpush3.bf16.msra.mxu1 %v599_v25 }
 0x2c1   :  { %1009 = vmatprep.subr.bf16.mxu1 %v598_v26 }
 0x2c4   :  { %1010 = vmatpush3.bf16.msra.mxu1 %v598_v26 }
 0x2c5   :  { %1011 = vmatprep.subr.bf16.mxu1 %v597_v27 }
 0x2c8   :  { %1012 = vmatpush3.bf16.msra.mxu1 %v597_v27 }
 0x2c9   :  { %1013 = vmatprep.subr.bf16.mxu1 %v596_v28 }
 0x2cc   :  { %1014 = vmatpush3.bf16.msra.mxu1 %v596_v28 }
 0x2cd   :  { %1015 = vmatprep.subr.bf16.mxu1 %v595_v29 }
 0x2d0   :  { %1016 = vmatpush3.bf16.msra.mxu1 %v595_v29 }
 0x2d1   :  { %1017 = vmatprep.subr.bf16.mxu1 %v594_v30 }
 0x2d4   :  { %1018 = vmatpush3.bf16.msra.mxu1 %v594_v30 }
 0x2d5   :  { %1019 = vmatprep.subr.bf16.mxu1 %v593_v31 }
 0x2d8   :  { %1020 = vmatpush3.bf16.msra.mxu1 %v593_v31 }
 0x2db   :  { %1022 = vmatmul.mubr.bf16.vlgmr.msra.gmra.mxu1 %v1190_v35 }
 0x2dc   :  { %1025 = vmatprep.mubr.bf16.mxu1 %v1192_v37 }
 0x2e3   :  { %1026 = vmatmul.mubr.bf16.gmra.mxu1 %v1196_v40 }
 0x2e4   :  { %1029 = vmatprep.mubr.bf16.mxu1 %v1198_v41 }
 0x2eb   :  { %1030 = vmatmul.mubr.bf16.gmra.mxu1 %v1202_v42 }
 0x2ec   :  { %1033 = vmatprep.mubr.bf16.mxu1 %v1204_v43 }
 0x2f3   :  { %1034 = vmatmul.mubr.bf16.gmra.mxu1 %v1208_v44 }
 0x39b   :  { %v1023_v33 = vpop.f32.mrf.mxu1 }
 0x39c   :  { %v650_v35 = vadd.f32 %v1023_v33, %v1225_v32 }
 0x39d   :  { %v641_v34 = vpop.f32.mrf.mxu1 }
 0x39e   :  { %v706_v37 = vmax.f32 %v650_v35, 0.0  ;;  %v642_v40 = vadd.f32 %v1225_v32, %v641_v34 }
 0x39f   :  { %v1024_v36 = vpop.f32.mrf.mxu1 }
 0x3a0   :  { %722 = vst [vmem:[#allocation8 + $0x10] sm:$0xff] %v706_v37  ;;  %v704_v41 = vmax.f32 %v642_v40, 0.0  ;;  %v653_v42 = vadd.f32 %v1024_v36, %v1225_v32 }
 0x3a1   :  { %v644_v43 = vpop.f32.mrf.mxu1 }
 0x3a2   :  { %720 = vst [vmem:[#allocation8] sm:$0xff] %v704_v41  ;;  %v707_v44 = vmax.f32 %v653_v42, 0.0  ;;  %v645_v38 = vadd.f32 %v1225_v32, %v644_v43 }
 0x3a3   :  { %v1027_v39 = vpop.f32.mrf.mxu1 }
 0x3a4   :  { %723 = vst [vmem:[#allocation8 + $0x18] sm:$0xff] %v707_v44  ;;  %v705_v45 = vmax.f32 %v645_v38, 0.0  ;;  %v666_v46 = vadd.f32 %v1027_v39, %v1225_v32 }
 0x3a5   :  { %v657_v47 = vpop.f32.mrf.mxu1 }
 0x3a6   :  { %721 = vst [vmem:[#allocation8 + $0x8] sm:$0xff] %v705_v45  ;;  %v710_v48 = vmax.f32 %v666_v46, 0.0  ;;  %v658_v49 = vadd.f32 %v1225_v32, %v657_v47 }
 0x3a7   :  { %v1028_v50 = vpop.f32.mrf.mxu1 }
 0x3a8   :  { %726 = vst [vmem:[#allocation8 + $0x30] sm:$0xff] %v710_v48  ;;  %v708_v51 = vmax.f32 %v658_v49, 0.0  ;;  %v669_v52 = vadd.f32 %v1028_v50, %v1225_v32 }
 0x3a9   :  { %v660_v53 = vpop.f32.mrf.mxu1 }
 0x3aa   :  { %724 = vst [vmem:[#allocation8 + $0x20] sm:$0xff] %v708_v51  ;;  %v711_v54 = vmax.f32 %v669_v52, 0.0  ;;  %v661_v55 = vadd.f32 %v1225_v32, %v660_v53 }
 0x3ab   :  { %v1031_v56 = vpop.f32.mrf.mxu1 }
 0x3ac   :  { %727 = vst [vmem:[#allocation8 + $0x38] sm:$0xff] %v711_v54  ;;  %v709_v57 = vmax.f32 %v661_v55, 0.0  ;;  %v682_v58 = vadd.f32 %v1031_v56, %v1225_v32 }
 0x3ad   :  { %v673_v59 = vpop.f32.mrf.mxu1 }
 0x3ae   :  { %725 = vst [vmem:[#allocation8 + $0x28] sm:$0xff] %v709_v57  ;;  %v714_v60 = vmax.f32 %v682_v58, 0.0  ;;  %v674_v61 = vadd.f32 %v1225_v32, %v673_v59 }
 0x3af   :  { %v1032_v62 = vpop.f32.mrf.mxu1 }
 0x3b0   :  { %730 = vst [vmem:[#allocation8 + $0x50] sm:$0xff] %v714_v60  ;;  %v712_v63 = vmax.f32 %v674_v61, 0.0  ;;  %v685_v0 = vadd.f32 %v1032_v62, %v1225_v32 }
 0x3b1   :  { %v676_v1 = vpop.f32.mrf.mxu1 }
 0x3b2   :  { %728 = vst [vmem:[#allocation8 + $0x40] sm:$0xff] %v712_v63  ;;  %v715_v2 = vmax.f32 %v685_v0, 0.0  ;;  %v677_v3 = vadd.f32 %v1225_v32, %v676_v1 }
 0x3b3   :  { %v1035_v4 = vpop.f32.mrf.mxu1 }
 0x3b4   :  { %731 = vst [vmem:[#allocation8 + $0x58] sm:$0xff] %v715_v2  ;;  %v713_v5 = vmax.f32 %v677_v3, 0.0  ;;  %v698_v6 = vadd.f32 %v1035_v4, %v1225_v32 }
 0x3b5   :  { %v689_v7 = vpop.f32.mrf.mxu1 }
 0x3b6   :  { %729 = vst [vmem:[#allocation8 + $0x48] sm:$0xff] %v713_v5  ;;  %v718_v8 = vmax.f32 %v698_v6, 0.0  ;;  %v690_v9 = vadd.f32 %v1225_v32, %v689_v7 }
 0x3b7   :  { %v1036_v10 = vpop.f32.mrf.mxu1 }
 0x3b8   :  { %734 = vst [vmem:[#allocation8 + $0x70] sm:$0xff] %v718_v8  ;;  %v716_v12 = vmax.f32 %v690_v9, 0.0  ;;  %v701_v13 = vadd.f32 %v1036_v10, %v1225_v32 }
 0x3b9   :  { %v692_v14 = vpop.f32.mrf.mxu1 }
 0x3ba   :  { %732 = vst [vmem:[#allocation8 + $0x60] sm:$0xff] %v716_v12  ;;  %v719_v15 = vmax.f32 %v701_v13, 0.0  ;;  %v693_v16 = vadd.f32 %v1225_v32, %v692_v14 }
 0x3bc   :  { %735 = vst [vmem:[#allocation8 + $0x78] sm:$0xff] %v719_v15  ;;  %v717_v18 = vmax.f32 %v693_v16, 0.0 }
 0x3be   :  { %733 = vst [vmem:[#allocation8 + $0x68] sm:$0xff] %v717_v18 }
 0x3bf   :  { %1124 = shalt.err (!%p1121_p5)
}
 0x3c0   :  { %747 = dma.vmem_to_hbm [thread:$0]  %s742_s9, 2048, %s1253_s4, [#allocation4], %s1140_s18, %s1140_s18, %s1141_s19  }
 0x3c1   :  { %1137 = dma.done.wait [#allocation4], 2048  }
 0x3c2   :  { %1138 = vsyncadd [#allocation4], 4294965248 }
 0x3c3   :  { %751 = vsyncpa [#allocation3], 1 }
 0x3c4   :  { %752 = vsyncpa [#allocation6], 1 }
 0x3c5   :  { %753 = vsyncpa [#allocation4], 1 }

</bundles_post_ra>
